<compile_context>
chip_gen: v7x
topology: tpu7x:2x2x1
jax: 0.10.0
libtpu: 0.0.40
codegen_flags: <defaults>
</compile_context>

<pallas_src>
import jax
import jax.numpy as jnp
from jax import lax
from jax.experimental import pallas as pl
from jax.experimental.pallas import tpu as pltpu

IGNORE_INDEX = -100


# ----------------------------------------------------------------------------
# Kernel 1: masked-LM cross-entropy (the loss head of BertForMaskedLM).
# ----------------------------------------------------------------------------
def _mlm_ce_kernel(x_ref, lbl_ref, out_ref):
    """Per-tile partial sum of -log_softmax(x)[row, label], ignoring -100 rows.

    x_ref:   (tile_n, V) logits tile
    lbl_ref: (tile_n, 1) int32 labels (-100 = ignore)
    out_ref: (1, 8, 128) partial-sum block for this tile (value broadcast)
    """
    x = x_ref[...].astype(jnp.float32)
    lbl = lbl_ref[...]                                           # (tile_n, 1)

    # log-softmax rewrite: loss_row = (m + log(sum(exp(x - m)))) - x[row, label]
    m = jnp.max(x, axis=1, keepdims=True)                        # (tile_n, 1)
    lse = jnp.log(jnp.sum(jnp.exp(x - m), axis=1, keepdims=True))  # one log/row
    col = lax.broadcasted_iota(jnp.int32, x.shape, 1)
    picked = jnp.sum(jnp.where(col == lbl, x, 0.0), axis=1, keepdims=True)
    valid = lbl != IGNORE_INDEX
    loss_rows = jnp.where(valid, (m - picked) + lse, 0.0)        # (tile_n, 1)

    part = jnp.sum(loss_rows, axis=0, keepdims=True)             # (1, 1)
    out_ref[...] = jnp.broadcast_to(part.reshape(1, 1, 1), out_ref.shape)


def _pick_tile_n(n_rows: int, n_classes: int,
                 budget_bytes: int = 8 * 1024 * 1024) -> int:
    # Double-buffered f32 logits tile must fit the budget (safe on v5e/v6e/v7x,
    # where the v7x 64 MiB VMEM is the binding constraint).
    t = budget_bytes // (2 * 4 * max(n_classes, 1))
    t = min(int(t), 1024, ((n_rows + 7) // 8) * 8)
    t = (t // 8) * 8
    return max(t, 8)


def masked_lm_loss(logits: jax.Array, labels: jax.Array) -> jax.Array:
    """CrossEntropyLoss(ignore_index=-100, reduction='mean') over (N, V) logits."""
    n, v = logits.shape
    labels = labels.astype(jnp.int32)

    tile_n = _pick_tile_n(n, v)
    num_tiles = pl.cdiv(n, tile_n)
    n_pad = num_tiles * tile_n
    if n_pad != n:                                  # ragged N: pad, never tile_n=n
        logits = jnp.pad(logits, ((0, n_pad - n), (0, 0)))
        labels = jnp.pad(labels, (0, n_pad - n), constant_values=IGNORE_INDEX)
    labels2d = labels.reshape(n_pad, 1)

    partials = pl.pallas_call(
        _mlm_ce_kernel,
        out_shape=jax.ShapeDtypeStruct((num_tiles, 8, 128), jnp.float32),
        grid_spec=pltpu.PrefetchScalarGridSpec(
            num_scalar_prefetch=0,
            grid=(num_tiles,),
            in_specs=[
                pl.BlockSpec((tile_n, v), lambda i: (i, 0)),      # logits tile
                pl.BlockSpec((tile_n, 1), lambda i: (i, 0)),      # int labels
            ],
            out_specs=pl.BlockSpec((1, 8, 128), lambda i: (i, 0, 0)),
        ),
        compiler_params=pltpu.CompilerParams(
            dimension_semantics=("parallel",),        # per-tile partials, no accum
            vmem_limit_bytes=32 * 1024 * 1024,
        ),
    )(logits, labels2d)

    total = jnp.sum(partials[:, 0, 0])
    count = jnp.sum((labels != IGNORE_INDEX).astype(jnp.float32))
    return total / jnp.maximum(count, 1.0)


# ----------------------------------------------------------------------------
# Kernel 2: MTB relation head (entity-state gather + similarity + BCE logits).
# ----------------------------------------------------------------------------
def _relation_kernel(pos_ref, lh_ref, lt_ref, rh_ref, rt_ref, lbl_ref, out_ref):
    """Per-example BCE-with-logits of the entity-pair similarity.

    lh/lt/rh/rt refs: (1, 1, H) hidden states gathered by the index_maps
    lbl_ref:          (B,) float32 labels in SMEM (1-D: no [8,128] padding)
    out_ref:          (1, 8, 128) per-example loss block (value broadcast)
    """
    del pos_ref                          # consumed by the gather index_maps
    b = pl.program_id(0)

    lh = lh_ref[...].astype(jnp.float32)
    lt = lt_ref[...].astype(jnp.float32)
    rh = rh_ref[...].astype(jnp.float32)
    rt = rt_ref[...].astype(jnp.float32)

    # similarity = <concat(lh,lt), concat(rh,rt)> = <lh,rh> + <lt,rt>
    prod = lh * rh + lt * rt                                     # (1, 1, H)
    sim = jnp.sum(prod, axis=-1, keepdims=True)                  # (1, 1, 1)

    y = lbl_ref[b]
    # Numerically stable BCEWithLogits (no sigmoid-then-log).
    bce = jnp.maximum(sim, 0.0) - sim * y + jnp.log1p(jnp.exp(-jnp.abs(sim)))
    out_ref[...] = jnp.broadcast_to(bce, out_ref.shape)


def mtb_relation_loss(l_hidden, r_hidden, l_ph, l_pt, r_ph, r_pt, label):
    b, s, h = l_hidden.shape
    # Flatten so the gather happens on a leading grid-friendly axis; only the
    # 4 needed rows per example are DMA'd (no dense one-hot / full-seq reads).
    l_flat = l_hidden.reshape(b * s, 1, h)
    r_flat = r_hidden.reshape(b * s, 1, h)
    # Flat 1-D position table (4*B,) -> minimal SMEM footprint for the prefetch.
    pos = jnp.concatenate(
        [l_ph, l_pt, r_ph, r_pt], axis=0).astype(jnp.int32)       # (4*B,)
    label_sm = label.astype(jnp.float32).reshape(b)               # (B,) 1-D SMEM

    def row_spec(which, batch=b, seq_len=s):
        # Data-dependent leading block index: flattened row = i*S + pos[which*B + i].
        return pl.BlockSpec(
            (1, 1, h),
            lambda i, pos_ref, w=which, B=batch, S=seq_len: (
                i * S + pos_ref[w * B + i], 0, 0),
        )

    per_example = pl.pallas_call(
        _relation_kernel,
        out_shape=jax.ShapeDtypeStruct((b, 8, 128), jnp.float32),
        grid_spec=pltpu.PrefetchScalarGridSpec(
            num_scalar_prefetch=1,                 # entity positions in SMEM
            grid=(b,),
            in_specs=[
                row_spec(0),                       # l_hidden[b, l_ph[b]]
                row_spec(1),                       # l_hidden[b, l_pt[b]]
                row_spec(2),                       # r_hidden[b, r_ph[b]]
                row_spec(3),                       # r_hidden[b, r_pt[b]]
                pl.BlockSpec(memory_space=pltpu.SMEM),   # labels (B,)
            ],
            out_specs=pl.BlockSpec((1, 8, 128), lambda i, pos_ref: (i, 0, 0)),
        ),
        compiler_params=pltpu.CompilerParams(
            dimension_semantics=("parallel",),
            vmem_limit_bytes=32 * 1024 * 1024,
        ),
    )(pos, l_flat, l_flat, r_flat, r_flat, label_sm)

    return jnp.mean(per_example[:, 0, 0])


# ----------------------------------------------------------------------------
# MTB forward (loss heads only; the BERT encoder is represented by stand-ins).
# ----------------------------------------------------------------------------
def mtb_forward_losses(l_logits, l_mlm_labels, r_logits, r_mlm_labels,
                       l_hidden, r_hidden, l_ph, l_pt, r_ph, r_pt, label):
    # TODO(synk): BertForMaskedLM encoder / BertTokenizer / host-side random
    # mask_tokens are not translatable to Pallas; logits, hidden states and
    # MLM labels are taken as inputs instead.
    m_loss = masked_lm_loss(l_logits, l_mlm_labels) + masked_lm_loss(
        r_logits, r_mlm_labels)
    r_loss = mtb_relation_loss(l_hidden, r_hidden, l_ph, l_pt, r_ph, r_pt, label)
    return m_loss, r_loss


if __name__ == "__main__":
    key = jax.random.PRNGKey(0)
    k = jax.random.split(key, 10)

    B, S, H, V = 2, 8, 32, 64   # small stand-in shapes (real: S~128+, H=768, V=30522)

    # Stand-ins for the BertForMaskedLM outputs / mask_tokens labels.
    l_logits = jax.random.normal(k[0], (B * S, V), dtype=jnp.float32)
    r_logits = jax.random.normal(k[1], (B * S, V), dtype=jnp.float32)
    l_hidden = jax.random.normal(k[2], (B, S, H), dtype=jnp.float32)
    r_hidden = jax.random.normal(k[3], (B, S, H), dtype=jnp.float32)

    def make_mlm_labels(kk):
        ids = jax.random.randint(kk, (B * S,), 0, V)
        masked = jax.random.bernoulli(jax.random.fold_in(kk, 1), 0.15, (B * S,))
        lbl = jnp.where(masked, ids, IGNORE_INDEX)
        return lbl.at[0].set(ids[0])        # ensure >=1 supervised token

    l_mlm_labels = make_mlm_labels(k[4])
    r_mlm_labels = make_mlm_labels(k[5])

    l_ph = jax.random.randint(k[6], (B,), 0, S)
    l_pt = jax.random.randint(k[7], (B,), 0, S)
    r_ph = jax.random.randint(k[8], (B,), 0, S)
    r_pt = jax.random.randint(k[9], (B,), 0, S)
    label = jax.random.bernoulli(jax.random.fold_in(key, 7), 0.5, (B,)).astype(
        jnp.float32)

    m_loss, r_loss = mtb_forward_losses(
        l_logits, l_mlm_labels, r_logits, r_mlm_labels,
        l_hidden, r_hidden, l_ph, l_pt, r_ph, r_pt, label)
    m_loss, r_loss = jax.block_until_ready((m_loss, r_loss))

    # --- pure-JAX references -------------------------------------------------
    def mlm_ref(logits, labels):
        valid = labels != IGNORE_INDEX
        logp = jax.nn.log_softmax(logits.astype(jnp.float32), axis=-1)
        safe = jnp.where(valid, labels, 0)
        picked = jnp.take_along_axis(logp, safe[:, None], axis=1)[:, 0]
        return -jnp.sum(jnp.where(valid, picked, 0.0)) / jnp.maximum(
            jnp.sum(valid.astype(jnp.float32)), 1.0)

    def rel_ref(lh, rh, lph, lpt, rph, rpt, y):
        idx = jnp.arange(B)
        l_state = jnp.concatenate([lh[idx, lph], lh[idx, lpt]], axis=1)
        r_state = jnp.concatenate([rh[idx, rph], rh[idx, rpt]], axis=1)
        sim = jnp.sum(l_state * r_state, axis=1)
        bce = jnp.maximum(sim, 0.0) - sim * y + jnp.log1p(jnp.exp(-jnp.abs(sim)))
        return jnp.mean(bce)

    m_ref = mlm_ref(l_logits, l_mlm_labels) + mlm_ref(r_logits, r_mlm_labels)
    r_ref = rel_ref(l_hidden, r_hidden, l_ph, l_pt, r_ph, r_pt, label)

    assert jnp.allclose(m_loss, m_ref, rtol=1e-5, atol=1e-5), (m_loss, m_ref)
    assert jnp.allclose(r_loss, r_ref, rtol=1e-5, atol=1e-5), (r_loss, r_ref)

    print("KERNEL_OK")
</pallas_src>

<mosaic_0001>
module attributes {stable_mosaic.version = 11 : i64} {
  func.func @_mlm_ce_kernel(%arg0: i32, %arg1: memref<16x64xf32, #tpu.memory_space<vmem>>, %arg2: memref<16x1xi32, #tpu.memory_space<vmem>>, %arg3: memref<1x8x128xf32, #tpu.memory_space<vmem>>) attributes {dimension_semantics = [#tpu.dimension_semantics<parallel>], iteration_bounds = array<i64: 1>, scalar_prefetch = 0 : i64, scratch_operands = 0 : i64, tpu.core_type = #tpu.core_type<tc>, window_params = [{transform_indices = @transform_0, window_bounds = array<i64: 16, 64>}, {transform_indices = @transform_1, window_bounds = array<i64: 16, 1>}, {transform_indices = @transform_2, window_bounds = array<i64: 1, 8, 128>}]} {
    %c0 = arith.constant 0 : index
    %c0_0 = arith.constant 0 : index
    %0 = vector.load %arg1[%c0, %c0_0] : memref<16x64xf32, #tpu.memory_space<vmem>>, vector<16x64xf32>
    %c0_1 = arith.constant 0 : index
    %c0_2 = arith.constant 0 : index
    %1 = vector.load %arg2[%c0_1, %c0_2] : memref<16x1xi32, #tpu.memory_space<vmem>>, vector<16x1xi32>
    %cst = arith.constant dense<0xFF800000> : vector<16xf32>
    %2 = vector.multi_reduction <maximumf>, %0, %cst [1] : vector<16x64xf32> to vector<16xf32>
    %3 = vector.shape_cast %2 : vector<16xf32> to vector<16x1xf32>
    %4 = vector.broadcast %3 : vector<16x1xf32> to vector<16x64xf32>
    %5 = arith.subf %0, %4 : vector<16x64xf32>
    %6 = math.exp %5 : vector<16x64xf32>
    %cst_3 = arith.constant dense<0.000000e+00> : vector<16xf32>
    %7 = vector.multi_reduction <add>, %6, %cst_3 [1] : vector<16x64xf32> to vector<16xf32>
    %8 = vector.shape_cast %7 : vector<16xf32> to vector<16x1xf32>
    %9 = math.log %8 : vector<16x1xf32>
    %10 = tpu.iota {dimensions = array<i32: 1>} : vector<16x64xi32>
    %11 = vector.broadcast %1 : vector<16x1xi32> to vector<16x64xi32>
    %12 = arith.cmpi eq, %10, %11 : vector<16x64xi32>
    %cst_4 = arith.constant 0.000000e+00 : f32
    %13 = vector.broadcast %cst_4 : f32 to vector<16x64xf32>
    %14 = arith.select %12, %0, %13 : vector<16x64xi1>, vector<16x64xf32>
    %cst_5 = arith.constant dense<0.000000e+00> : vector<16xf32>
    %15 = vector.multi_reduction <add>, %14, %cst_5 [1] : vector<16x64xf32> to vector<16xf32>
    %16 = vector.shape_cast %15 : vector<16xf32> to vector<16x1xf32>
    %c-100_i32 = arith.constant -100 : i32
    %17 = vector.broadcast %c-100_i32 : i32 to vector<16x1xi32>
    %18 = arith.cmpi ne, %1, %17 : vector<16x1xi32>
    %19 = arith.subf %3, %16 : vector<16x1xf32>
    %20 = arith.addf %19, %9 : vector<16x1xf32>
    %cst_6 = arith.constant 0.000000e+00 : f32
    %21 = vector.broadcast %cst_6 : f32 to vector<16x1xf32>
    %22 = arith.select %18, %20, %21 : vector<16x1xi1>, vector<16x1xf32>
    %cst_7 = arith.constant dense<0.000000e+00> : vector<1xf32>
    %23 = vector.multi_reduction <add>, %22, %cst_7 [0] : vector<16x1xf32> to vector<1xf32>
    %24 = vector.shape_cast %23 : vector<1xf32> to vector<1x1xf32>
    %25 = vector.shape_cast %24 : vector<1x1xf32> to vector<1x1x1xf32>
    %26 = vector.shape_cast %25 : vector<1x1x1xf32> to vector<1x1x1xf32>
    %27 = vector.broadcast %26 : vector<1x1x1xf32> to vector<1x8x128xf32>
    %c0_8 = arith.constant 0 : index
    %c0_9 = arith.constant 0 : index
    %c0_10 = arith.constant 0 : index
    %28 = vector.load %arg3[%c0_8, %c0_9, %c0_10] : memref<1x8x128xf32, #tpu.memory_space<vmem>>, vector<1x8x128xf32>
    tpu.vector_store %arg3[%c0_8, %c0_9, %c0_10], %27 {strides = array<i32>} : memref<1x8x128xf32, #tpu.memory_space<vmem>>, vector<1x8x128xf32>,
    return
  }
  func.func @transform_0(%arg0: i32) -> (i32, i32) {
    %c0_i32 = arith.constant 0 : i32
    %c0_i32_0 = arith.constant 0 : i32
    return %arg0, %c0_i32 : i32, i32
  }
  func.func @transform_1(%arg0: i32) -> (i32, i32) {
    %c0_i32 = arith.constant 0 : i32
    %c0_i32_0 = arith.constant 0 : i32
    return %arg0, %c0_i32 : i32, i32
  }
  func.func @transform_2(%arg0: i32) -> (i32, i32, i32) {
    %c0_i32 = arith.constant 0 : i32
    %c0_i32_0 = arith.constant 0 : i32
    %c0_i32_1 = arith.constant 0 : i32
    return %arg0, %c0_i32, %c0_i32_0 : i32, i32, i32
  }
}

</mosaic_0001>

<bundles_post_ra>
// kernel: tpu_custom_call.1
= control target key start
LH: loop header
LB: loop body
LE: loop exit
PB: predicated region body
PF: predicated region fallthrough
CT: control target
= control target key end

     0   :  { %vm16_vm0 = vcmask 523264   ;;  %v131_v4 = vmov 0   ;;  %s178_s0 = inlined_call_operand.vmem [shape: f32[16,64], index: 0, kind: input, shape index: {}]   ;;  %s179_s1 = inlined_call_operand.vmem [shape: s32[16,1], index: 1, kind: input, shape index: {}]   ;;  %s180_s2 = inlined_call_operand.hbm [shape: f32[1,8,128], index: 2, kind: output, shape index: {}]  }
   0x1   :  { %v12_v0 = vld [vmem:[%s178_s0] sm:$0xff]  ;;  %v13_v1 = vld [vmem:[%s178_s0 + $0x8] sm:$0xff]  ;;  %97 = vset.pattern.permute.xlu1 %v131_v4  ;;  %98 = vset.pattern.permute.xlu0 %v131_v4 }
   0x2   :  { %v14_v2 = vld [vmem:[%s179_s1] sm:$0xff]  ;;  %v17_v3 = vsel %vm16_vm0, %v12_v0, -inf }
   0x3   :  { %7 = vsyncpa [#allocation3], 0  ;;  %18 = vmax.xlane.f32.xlu0 %v17_v3  ;;  %42 = vperm.xlu1 %97, %v14_v2   ;;  %v20_v5 = vsel %vm16_vm0, %v13_v1, -inf  ;;  %v15_v6 = vld [vmem:[%s179_s1 + $0x8] sm:$0xff]  ;;  %v39_v11 = vlaneseq  ;;  %vm57_vm3 = vcmp.ne.s32.totalorder %v14_v2, 4294967196  ;;  %vm65_vm5 = vcmask 7168  }
   0x4   :  { %vm58_vm4 = vcmp.ne.s32.totalorder %v15_v6, 4294967196  ;;  %s132_s0 = smov [#allocation2]  }
   0x5   :  { %v40_v15 = vand.u32 127, %v39_v11  ;;  %s87_s1 = sshll.u32 %s132_s0, 4  ;;  %s88_s1 = int_to_ptr.vmem [resolvable:$true] %s87_s1 }
   0x6   :  { %s107_s17 = scalar_lea.vmem %s88_s1, 128  ;;  %p112_p1 = scmp.lt.s32.totalorder %s88_s1, %s88_s1 }
   0x7   :  { %21 = vmax.xlane.f32.xlu0 %v20_v5  ;;  %45 = vperm.xlu1 %97, %v15_v6   ;;  %p108_p0 = scmp.ne.s32.totalorder %s88_s1, %s107_s17  ;;  %p113_p2 = scmp.lt.s32.totalorder %s107_s17, %s107_s17 }
   0x9   :  { %p114_p3 = por %p113_p2, %p112_p1 }
   0xb   :  { %p115_p4 = pnand %p114_p3, %p108_p0 }
  0x82   :  { %v43_v14 = vpop.permute.xlu1 %42 }
  0x83   :  { %vm47_vm1 = vcmp.eq.s32.totalorder %v40_v15, %v43_v14 }
  0x84   :  { %v49_v18 = vsel %vm47_vm1, %v12_v0, 0.0 }
  0x85   :  { %v51_v20 = vsel %vm16_vm0, %v49_v18, 0.0 }
  0x86   :  { %v46_v16 = vpop.permute.xlu1 %45 }
  0x87   :  { %vm48_vm2 = vcmp.eq.s32.totalorder %v40_v15, %v46_v16 }
  0x88   :  { %v50_v22 = vsel %vm48_vm2, %v13_v1, 0.0 }
  0x89   :  { %v54_v24 = vsel %vm16_vm0, %v50_v22, 0.0 }
  0x90   :  { %v19_v7 = vpop.xlane.xlu0 %18 }
  0x91   :  { %v23_v8 = vsub.f32 %v12_v0, %v19_v7 }
  0x93   :  { %v25_v9 = vmul.f32 1.442695, %v23_v8 }
  0x94   :  { %v22_v10 = vpop.xlane.xlu0 %21 }
  0x95   :  { %99 = vpow2.f32 %v25_v9  ;;  %v24_v12 = vsub.f32 %v13_v1, %v22_v10 }
  0x97   :  { %v27_v13 = vmul.f32 1.442695, %v24_v12 }
  0x99   :  { %101 = vpow2.f32 %v27_v13 }
  0x9f   :  { %v100_v17 = vpop.eup %99 }
  0xa0   :  { %v29_v19 = vsel %vm16_vm0, %v100_v17, 0.0 }
  0xa1   :  { %30 = vadd.xlane.f32.xlu0 %v29_v19 }
  0xa3   :  { %v102_v21 = vpop.eup %101 }
  0xa4   :  { %v32_v23 = vsel %vm16_vm0, %v102_v21, 0.0 }
  0xa5   :  { %52 = vadd.xlane.f32.xlu0 %v51_v20  ;;  %33 = vadd.xlane.f32.xlu1 %v32_v23 }
  0xa9   :  { %55 = vadd.xlane.f32.xlu0 %v54_v24 }
 0x12e   :  { %v31_v25 = vpop.xlane.xlu0 %30 }
 0x12f   :  { %103 = vlog2.f32 %v31_v25 }
 0x132   :  { %v34_v26 = vpop.xlane.xlu1 %33  ;;  %v53_v27 = vpop.xlane.xlu0 %52 }
 0x133   :  { %105 = vlog2.f32 %v34_v26  ;;  %v59_v30 = vsub.f32 %v19_v7, %v53_v27 }
 0x136   :  { %v56_v31 = vpop.xlane.xlu0 %55 }
 0x137   :  { %v60_v35 = vsub.f32 %v22_v10, %v56_v31 }
 0x139   :  { %v104_v28 = vpop.eup %103 }
 0x13a   :  { %v36_v29 = vmul.f32 0.6931472, %v104_v28 }
 0x13c   :  { %v61_v32 = vadd.f32 %v59_v30, %v36_v29 }
 0x13d   :  { %v106_v33 = vpop.eup %105 }
 0x13e   :  { %v38_v34 = vmul.f32 0.6931472, %v106_v33  ;;  %v63_v36 = vsel %vm57_vm3, %v61_v32, 0.0 }
 0x13f   :  { %v66_v39 = vsel %vm65_vm5, %v63_v36, 0.0 }
 0x140   :  { %v62_v37 = vadd.f32 %v60_v35, %v38_v34 }
 0x142   :  { %v64_v38 = vsel %vm58_vm4, %v62_v37, 0.0 }
 0x143   :  { %v67_v40 = vsel %vm65_vm5, %v64_v38, 0.0 }
 0x144   :  { %v68_v41 = vadd.f32 %v67_v40, %v66_v39 }
 0x146   :  { %v69_v42 = vrot.slane %v68_v41, 4 }
 0x148   :  { %v70_v43 = vadd.f32 %v69_v42, %v68_v41 }
 0x14a   :  { %v71_v44 = vrot.slane %v70_v43, 2 }
 0x14c   :  { %v72_v45 = vadd.f32 %v71_v44, %v70_v43 }
 0x14e   :  { %v73_v46 = vrot.slane %v72_v45, 1 }
 0x150   :  { %v74_v47 = vadd.f32 %v73_v46, %v72_v45 }
 0x152   :  { %77 = vperm.xlu0 %98, %v74_v47  }
 0x1d1   :  { %v78_v48 = vpop.permute.xlu0 %77 }
 0x1d2   :  { %80 = vst [vmem:[#allocation2] sm:$0xff] %v78_v48 }
 0x1d3   :  { %118 = shalt.err (!%p115_p4)
}
 0x1d4   :  { %s119_s20 = scalar_lea.hbm %s180_s2, 128 }
 0x1d5   :  { %p120_p5 = scmp.ne.s32.totalorder %s180_s2, %s119_s20  ;;  %p123_p6 = scmp.lt.u32.totalorder %s119_s20, %s180_s2 }
 0x1d7   :  { %p125_p7 = pnand %p123_p6, %p120_p5 }
 0x1d9   :  { %128 = shalt.err (!%p125_p7)
}
 0x1da   :  { %90 = dma.vmem_to_hbm [thread:$0]  %s88_s1, 128, %s180_s2, [#allocation3]  }
 0x1db   :  { %129 = dma.done.wait [#allocation3], 128  }
 0x1dc   :  { %130 = vsyncadd [#allocation3], 4294967168 }
 0x1dd   :  { %94 = vsyncpa [#allocation3], 1 }

</bundles_post_ra>
